<compile_context>
chip_gen: v7x
topology: tpu7x:2x2x1
jax: 0.10.0
libtpu: 0.0.40
codegen_flags: <defaults>
</compile_context>

<pallas_src>
import jax
import jax.numpy as jnp
from jax import lax
from jax.experimental import pallas as pl
from jax.experimental.pallas import tpu as pltpu


def _cnn_kernel(x_ref, w_ref, b_ref, o_ref):
    # x_ref: (BB, C)  block of batch rows
    # w_ref: (O, C)   Conv1d(kernel_size=1) weight, (out_channels, in_channels)
    # b_ref: (O, 1)   Conv1d bias
    # o_ref: (O, BB)  lane-dense output tile (batch on lanes); the wrapper
    #                 transposes/reshapes to the module's (B*O, 1) output.
    x = x_ref[...].astype(jnp.float32)
    w = w_ref[...].astype(jnp.float32)

    # Conv1d(C, O, k=1) on a length-1 sequence is exactly a Linear.  Contract
    # C with C so the result is (O, BB): the (large) batch dim lands on the
    # 128-wide lane axis -> unmasked stores (O=10 on lanes would force masked
    # partial stores on the single vst slot).
    logits = lax.dot_general(
        w, x,
        dimension_numbers=(((1,), (1,)), ((), ())),
        preferred_element_type=jnp.float32,
    ) + b_ref[...]

    # Flatten(0,1) gives (BB*O, 1); nn.Softmax() with the implicit dim picks
    # dim=1 for a 2-D input, i.e. a softmax over a length-1 axis per element.
    # exp(l - l) == 1.0 exactly and the singleton-axis sum equals it, so the
    # exact normalization below yields exactly 1.0 (no approx reciprocal,
    # which was the previous version's numerical-risk point).
    m = logits                  # max over the length-1 axis
    p = jnp.exp(logits - m)     # == 1.0 exactly
    denom = p                   # sum over the length-1 axis
    prob = p / denom            # exact VPU divide; == 1.0

    o_ref[...] = prob.astype(o_ref.dtype)


def cnn_forward(x, conv_w, conv_b, *, block_rows=1024):
    """x: (B, C) float32; conv_w: (O, C, 1); conv_b: (O,). Returns (B*O, 1)."""
    B, C = x.shape
    O = conv_w.shape[0]

    w_oc = conv_w.reshape(O, C)        # (O, C)
    b2d = conv_b.reshape(O, 1)         # (O, 1)

    # Fixed row tile capped at `block_rows` (1024*64*4 B = 256 KiB per x tile,
    # x2 for double buffering -> far under VMEM on v5e/v6e/v7x).  cdiv grid
    # lets Pallas mask the ragged last block; there is no BB=B fallback for
    # huge B, and for B > block_rows the grid has >= 2 parallel steps so both
    # v7x TensorCores engage.
    bb = B if B <= block_rows else block_rows
    grid = (pl.cdiv(B, bb),)

    probs_t = pl.pallas_call(
        _cnn_kernel,
        out_shape=jax.ShapeDtypeStruct((O, B), x.dtype),
        grid=grid,
        in_specs=[
            pl.BlockSpec((bb, C), lambda i: (i, 0)),   # batch rows for step i
            pl.BlockSpec((O, C), lambda i: (0, 0)),    # weight (resident)
            pl.BlockSpec((O, 1), lambda i: (0, 0)),    # bias   (resident)
        ],
        out_specs=pl.BlockSpec((O, bb), lambda i: (0, i)),
        compiler_params=pltpu.CompilerParams(
            dimension_semantics=("parallel",),
        ),
    )(x, w_oc, b2d)

    # Layout plumbing only: (O, B) -> (B, O) row-major, then the module's
    # unsqueeze(2) + Flatten(start_dim=0, end_dim=1) ordering -> (B*O, 1).
    return probs_t.T.reshape(B * O, 1)


def _reference(x, conv_w, conv_b):
    B, C = x.shape
    O = conv_w.shape[0]
    out = x @ conv_w.reshape(O, C).T + conv_b     # conv1d(k=1) on a len-1 seq
    out = out.reshape(B * O, 1)                   # Flatten(0,1) of (B, O, 1)
    return jax.nn.softmax(out, axis=1)            # nn.Softmax() implicit dim=1


if __name__ == "__main__":
    B, C, O = 2, 64, 10

    key = jax.random.PRNGKey(0)
    k_x, k_w, k_b = jax.random.split(key, 3)

    x = jax.random.normal(k_x, (B, C), dtype=jnp.float32)
    # PyTorch Conv1d default init bound: 1/sqrt(in_channels * kernel_size)
    bound = 1.0 / jnp.sqrt(C * 1.0)
    conv_w = jax.random.uniform(k_w, (O, C, 1), minval=-bound, maxval=bound,
                                dtype=jnp.float32)
    conv_b = jax.random.uniform(k_b, (O,), minval=-bound, maxval=bound,
                                dtype=jnp.float32)

    out = cnn_forward(x, conv_w, conv_b)
    out = jax.block_until_ready(out)

    ref = _reference(x, conv_w, conv_b)
    assert out.shape == (B * O, 1)
    assert jnp.allclose(out, ref, atol=1e-6, rtol=1e-6), "mismatch vs reference"

    print("KERNEL_OK")
</pallas_src>

<mosaic_0001>
module attributes {stable_mosaic.version = 11 : i64} {
  func.func @_cnn_kernel(%arg0: i32, %arg1: memref<2x64xf32, #tpu.memory_space<vmem>>, %arg2: memref<10x64xf32, #tpu.memory_space<vmem>>, %arg3: memref<10x1xf32, #tpu.memory_space<vmem>>, %arg4: memref<10x2xf32, #tpu.memory_space<vmem>>) attributes {dimension_semantics = [#tpu.dimension_semantics<parallel>], iteration_bounds = array<i64: 1>, scalar_prefetch = 0 : i64, scratch_operands = 0 : i64, tpu.core_type = #tpu.core_type<tc>, window_params = [{transform_indices = @transform_0, window_bounds = array<i64: 2, 64>}, {pipeline_mode = #tpu.pipeline_mode<synchronous>, transform_indices = @transform_1, window_bounds = array<i64: 10, 64>}, {pipeline_mode = #tpu.pipeline_mode<synchronous>, transform_indices = @transform_2, window_bounds = array<i64: 10, 1>}, {transform_indices = @transform_3, window_bounds = array<i64: 10, 2>}]} {
    %c0 = arith.constant 0 : index
    %c0_0 = arith.constant 0 : index
    %0 = vector.load %arg1[%c0, %c0_0] : memref<2x64xf32, #tpu.memory_space<vmem>>, vector<2x64xf32>
    %c0_1 = arith.constant 0 : index
    %c0_2 = arith.constant 0 : index
    %1 = vector.load %arg2[%c0_1, %c0_2] : memref<10x64xf32, #tpu.memory_space<vmem>>, vector<10x64xf32>
    %cst = arith.constant dense<0.000000e+00> : vector<10x2xf32>
    %2 = tpu.matmul %1, %0, %cst {dimension_numbers = #tpu.dot_dimension_numbers<[1], [1], [0], [0], [0, 0, 1, 0], [], []>} : vector<10x64xf32>, vector<2x64xf32>, vector<10x2xf32> -> vector<10x2xf32>
    %c0_3 = arith.constant 0 : index
    %c0_4 = arith.constant 0 : index
    %3 = vector.load %arg3[%c0_3, %c0_4] : memref<10x1xf32, #tpu.memory_space<vmem>>, vector<10x1xf32>
    %4 = vector.broadcast %3 : vector<10x1xf32> to vector<10x2xf32>
    %5 = arith.addf %2, %4 : vector<10x2xf32>
    %6 = arith.subf %5, %5 : vector<10x2xf32>
    %7 = math.exp %6 : vector<10x2xf32>
    %8 = arith.divf %7, %7 : vector<10x2xf32>
    %c0_5 = arith.constant 0 : index
    %c0_6 = arith.constant 0 : index
    %9 = vector.load %arg4[%c0_5, %c0_6] : memref<10x2xf32, #tpu.memory_space<vmem>>, vector<10x2xf32>
    tpu.vector_store %arg4[%c0_5, %c0_6], %8 {strides = array<i32>} : memref<10x2xf32, #tpu.memory_space<vmem>>, vector<10x2xf32>,
    return
  }
  func.func @transform_0(%arg0: i32) -> (i32, i32) {
    %c0_i32 = arith.constant 0 : i32
    %c0_i32_0 = arith.constant 0 : i32
    return %arg0, %c0_i32 : i32, i32
  }
  func.func @transform_1(%arg0: i32) -> (i32, i32) {
    %c0_i32 = arith.constant 0 : i32
    %c0_i32_0 = arith.constant 0 : i32
    %c0_i32_1 = arith.constant 0 : i32
    return %c0_i32, %c0_i32_0 : i32, i32
  }
  func.func @transform_2(%arg0: i32) -> (i32, i32) {
    %c0_i32 = arith.constant 0 : i32
    %c0_i32_0 = arith.constant 0 : i32
    %c0_i32_1 = arith.constant 0 : i32
    return %c0_i32, %c0_i32_0 : i32, i32
  }
  func.func @transform_3(%arg0: i32) -> (i32, i32) {
    %c0_i32 = arith.constant 0 : i32
    %c0_i32_0 = arith.constant 0 : i32
    return %c0_i32, %arg0 : i32, i32
  }
}

</mosaic_0001>

<bundles_post_ra>
// kernel: tpu_custom_call.1
= control target key start
LH: loop header
LB: loop body
LE: loop exit
PB: predicated region body
PF: predicated region fallthrough
CT: control target
= control target key end

     0   :  { %vm29_vm0 = vcmask 523264   ;;  %v153_v2 = vmov 0   ;;  %vm126_vm1 = vcmask 9216   ;;  %vm124_vm2 = vcmask 15360   ;;  %s195_s0 = inlined_call_operand.vmem [shape: f32[2,64], index: 0, kind: input, shape index: {}]   ;;  %s196_s1 = inlined_call_operand.vmem [shape: f32[10,64], index: 1, kind: input, shape index: {}]   ;;  %s197_s2 = inlined_call_operand.vmem [shape: f32[10,1], index: 2, kind: input, shape index: {}]   ;;  %s198_s3 = inlined_call_operand.vmem [shape: f32[10,2], index: 3, kind: output, shape index: {}]  }
   0x1   :  { %v14_v0 = vld [vmem:[%s195_s0] sm:$0x3]  ;;  %144 = vset.pattern.permute.xlu0 %v153_v2  ;;  %v16_v4 = vld [vmem:[%s196_s1 + $0x8] sm:$0x3] }
   0x2   :  { %v15_v1 = vld [vmem:[%s196_s1] sm:$0xff]  ;;  %138 = vmatprep.subr.msk.mxu0 %vm29_vm0, %v14_v0  ;;  %v18_v5 = vld [vmem:[%s197_s2 + $0x8] sm:$0x3] }
   0x3   :  { %140 = vmatprep.mubr.msk.f32.mxu0 %vm29_vm0, %v15_v1  ;;  %v17_v3 = vld [vmem:[%s197_s2] sm:$0xff]  ;;  %139 = vmatpush3.xpose.msk.msra.mxu0 %vm29_vm0, %v14_v0 }
   0x4   :  { %21 = vperm.xlu0 %144, %v17_v3  }
   0x6   :  { %141 = vmatmul.mubr.msk.f32.vlgmr.msra.gmra.mrb[0].mxu0 %vm29_vm0, %v16_v4 }
   0x8   :  { %26 = vperm.xlu0 %144, %v18_v5  }
  0x83   :  { %v22_v6 = vpop.permute.xlu0 %21 }
  0x87   :  { %v27_v7 = vpop.permute.xlu0 %26 }
  0xd9   :  { %v142_v8 = vpop.f32.mrb[0].mxu0 }
  0xda   :  { %v111_v9 = vadd.f32 %v142_v8, %v27_v7  ;;  %v105_v10 = vpop.f32.mrb[1].mxu0 }
  0xdb   :  { %v106_v11 = vadd.f32 %v105_v10, %v22_v6 }
  0xdc   :  { %v115_v12 = vsub.f32 %v111_v9, %v111_v9 }
  0xdd   :  { %v114_v13 = vsub.f32 %v106_v11, %v106_v11 }
  0xde   :  { %v118_v14 = vmul.f32 1.442695, %v115_v12 }
  0xdf   :  { %v116_v15 = vmul.f32 1.442695, %v114_v13 }
  0xe0   :  { %145 = vpow2.f32 %v118_v14 }
  0xe1   :  { %147 = vpow2.f32 %v116_v15 }
  0xea   :  { %v146_v16 = vpop.eup %145 }
  0xeb   :  { %v148_v17 = vpop.eup %147  ;;  %149 = vrcp.f32 %v146_v16 }
  0xec   :  { %151 = vrcp.f32 %v148_v17 }
  0xf5   :  { %v150_v18 = vpop.eup %149 }
  0xf6   :  { %v152_v19 = vpop.eup %151  ;;  %v123_v20 = vmul.f32 %v150_v18, %v146_v16 }
  0xf7   :  { %v121_v21 = vmul.f32 %v152_v19, %v148_v17 }
  0xf8   :  { %127 = vst.msk [vmem:[%s198_s3 + $0x8] sm:$0x3] %vm126_vm1, %v123_v20 }
  0xf9   :  { %125 = vst.msk [vmem:[%s198_s3] sm:$0xff] %vm124_vm2, %v121_v21 }

</bundles_post_ra>
